<compile_context>
chip_gen: v7x
topology: tpu7x:2x2x1
jax: 0.10.0
libtpu: 0.0.40
codegen_flags: <defaults>
</compile_context>

<pallas_src>
import functools

import jax
import jax.numpy as jnp
from jax.experimental import pallas as pl
from jax.experimental.pallas import tpu as pltpu


# -------------------------- padding / layout constants --------------------------
IN_ALIGN = 8          # sublane alignment for x's feature dim / W1 rows
HIDDEN_PAD = 128      # hidden 40 -> 128: lane-dense intermediates, aligned K/N
OUT_ALIGN = 128       # lane-dense output slab
DEFAULT_TILE_B = 1024  # rows per grid step (sweepable; VMEM footprint is small)


def _round_up(x, m):
    return (x + m - 1) // m * m


def _pad2(a, rows, cols):
    r, c = a.shape
    return jnp.pad(a, ((0, rows - r), (0, cols - c)))


# ------------------------------------ kernel ------------------------------------
def mlp_kernel(x_ref, w1_ref, b1_ref, w2_ref, b2_ref, w3_ref, b3_ref, o_ref):
    # Layer 1: bf16 operands on the MXU, f32 accumulation, f32 bias + ReLU (VPU).
    h1 = jnp.dot(x_ref[...], w1_ref[...], preferred_element_type=jnp.float32)
    h1 = jnp.maximum(h1 + b1_ref[...], 0.0)
    # Layer 2.
    h2 = jnp.dot(h1.astype(w2_ref.dtype), w2_ref[...],
                 preferred_element_type=jnp.float32)
    h2 = jnp.maximum(h2 + b2_ref[...], 0.0)
    # Layer 3 (no activation), lane-dense f32 store.
    out = jnp.dot(h2.astype(w3_ref.dtype), w3_ref[...],
                  preferred_element_type=jnp.float32)
    o_ref[...] = (out + b3_ref[...]).astype(o_ref.dtype)


# ----------------------------------- wrapper ------------------------------------
def prepare_params(w1, b1, w2, b2, w3, b3):
    """Zero-pad params to aligned shapes once; weights bf16, biases f32."""
    in_n, _ = w1.shape
    out_n = w3.shape[1]
    in_p = _round_up(max(in_n, IN_ALIGN), IN_ALIGN)
    out_p = _round_up(max(out_n, 1), OUT_ALIGN)
    w1p = _pad2(w1, in_p, HIDDEN_PAD).astype(jnp.bfloat16)
    w2p = _pad2(w2, HIDDEN_PAD, HIDDEN_PAD).astype(jnp.bfloat16)
    w3p = _pad2(w3, HIDDEN_PAD, out_p).astype(jnp.bfloat16)
    b1p = _pad2(b1.reshape(1, -1), 1, HIDDEN_PAD).astype(jnp.float32)
    b2p = _pad2(b2.reshape(1, -1), 1, HIDDEN_PAD).astype(jnp.float32)
    b3p = _pad2(b3.reshape(1, -1), 1, out_p).astype(jnp.float32)
    return (w1p, b1p, w2p, b2p, w3p, b3p)


@functools.partial(jax.jit, static_argnames=("out_n", "tile_b"))
def mlp_forward(x, w1, b1, w2, b2, w3, b3, *, out_n, tile_b=DEFAULT_TILE_B):
    batch, in_n = x.shape
    in_p, hid_p = w1.shape
    out_p = w3.shape[1]

    # Batch tiling: keep the tile sublane-aligned, never larger than the
    # (8-aligned) batch itself, and pad the batch so the tile divides it
    # evenly. Tail rows are zeros and get sliced off below, so no garbage
    # rows appear in the user-visible output.
    tb = min(_round_up(tile_b, 8), _round_up(batch, 8))
    b_pad = _round_up(batch, tb)
    xp = jnp.pad(x, ((0, b_pad - batch), (0, in_p - in_n))).astype(jnp.bfloat16)

    grid = (b_pad // tb,)

    flops = 2 * b_pad * (in_p * hid_p + hid_p * hid_p + hid_p * out_p)
    bytes_accessed = (b_pad * in_p * 2
                      + (w1.size + w2.size + w3.size) * 2
                      + (b1.size + b2.size + b3.size) * 4
                      + b_pad * out_p * 4)

    const = lambda i: (0, 0)
    out = pl.pallas_call(
        mlp_kernel,
        out_shape=jax.ShapeDtypeStruct((b_pad, out_p), jnp.float32),
        grid=grid,
        in_specs=[
            pl.BlockSpec((tb, in_p), lambda i: (i, 0)),   # x: tiled over batch
            pl.BlockSpec(w1.shape, const),                # weights / biases stay
            pl.BlockSpec(b1.shape, const),                # resident in VMEM
            pl.BlockSpec(w2.shape, const),
            pl.BlockSpec(b2.shape, const),
            pl.BlockSpec(w3.shape, const),
            pl.BlockSpec(b3.shape, const),
        ],
        out_specs=pl.BlockSpec((tb, out_p), lambda i: (i, 0)),
        compiler_params=pltpu.CompilerParams(
            dimension_semantics=("parallel",)),
        cost_estimate=pl.CostEstimate(
            flops=flops, transcendentals=0, bytes_accessed=bytes_accessed),
    )(xp, w1, b1, w2, b2, w3, b3)

    return out[:batch, :out_n]


# -------------------------- init + reference (pure JAX) --------------------------
def xavier_normal(key, fan_in, fan_out):
    # torch.nn.init.xavier_normal_ : std = sqrt(2 / (fan_in + fan_out))
    std = (2.0 / (fan_in + fan_out)) ** 0.5
    return jax.random.normal(key, (fan_in, fan_out), jnp.float32) * std


def init_params(key, input_n, hidden, output_n):
    ks = jax.random.split(key, 6)
    w1 = xavier_normal(ks[0], input_n, hidden)
    b1 = jax.random.uniform(ks[1], (1, hidden), jnp.float32)  # init.uniform_ [0,1)
    w2 = xavier_normal(ks[2], hidden, hidden)
    b2 = jax.random.uniform(ks[3], (1, hidden), jnp.float32)
    w3 = xavier_normal(ks[4], hidden, output_n)
    b3 = jax.random.uniform(ks[5], (1, output_n), jnp.float32)
    return w1, b1, w2, b2, w3, b3


def mlp_reference(x, w1, b1, w2, b2, w3, b3):
    """Mirrors the kernel's bf16-input / f32-accumulate math."""
    hi = jax.lax.Precision.HIGHEST
    bf = lambda a: a.astype(jnp.bfloat16).astype(jnp.float32)
    h1 = jnp.maximum(jnp.dot(bf(x), bf(w1), precision=hi) + b1, 0.0)
    h2 = jnp.maximum(jnp.dot(bf(h1), bf(w2), precision=hi) + b2, 0.0)
    return jnp.dot(bf(h2), bf(w3), precision=hi) + b3


# TODO(synk): optimizer / meta_optimizer / MSE criteria of the PyTorch module are
# training utilities, not part of the forward pass, and are not ported here.

if __name__ == "__main__":
    input_n, hidden, output_n, batch = 4, 40, 1, 8

    key = jax.random.PRNGKey(0)
    kx, kp = jax.random.split(key)
    x = jax.random.normal(kx, (batch, input_n), jnp.float32)
    raw_params = init_params(kp, input_n, hidden, output_n)
    packed = prepare_params(*raw_params)

    # Small batch (single grid step).
    out = jax.block_until_ready(mlp_forward(x, *packed, out_n=output_n))
    ref = mlp_reference(x, *raw_params)
    assert out.shape == (batch, output_n)
    assert jnp.allclose(out, ref, atol=3e-2, rtol=3e-2), float(
        jnp.max(jnp.abs(out - ref)))

    # Multi-step grid + ragged batch (exercises batch padding / tiling path).
    x2 = jax.random.normal(jax.random.PRNGKey(1), (200, input_n), jnp.float32)
    out2 = jax.block_until_ready(
        mlp_forward(x2, *packed, out_n=output_n, tile_b=64))
    ref2 = mlp_reference(x2, *raw_params)
    assert out2.shape == (200, output_n)
    assert jnp.allclose(out2, ref2, atol=3e-2, rtol=3e-2), float(
        jnp.max(jnp.abs(out2 - ref2)))

    print("KERNEL_OK")
</pallas_src>

<mosaic_0001>
module attributes {stable_mosaic.version = 11 : i64} {
  func.func @mlp_kernel(%arg0: i32, %arg1: memref<8x8xbf16, #tpu.memory_space<vmem>>, %arg2: memref<8x128xbf16, #tpu.memory_space<vmem>>, %arg3: memref<1x128xf32, #tpu.memory_space<vmem>>, %arg4: memref<128x128xbf16, #tpu.memory_space<vmem>>, %arg5: memref<1x128xf32, #tpu.memory_space<vmem>>, %arg6: memref<128x128xbf16, #tpu.memory_space<vmem>>, %arg7: memref<1x128xf32, #tpu.memory_space<vmem>>, %arg8: memref<8x128xf32, #tpu.memory_space<vmem>>) attributes {dimension_semantics = [#tpu.dimension_semantics<parallel>], iteration_bounds = array<i64: 1>, scalar_prefetch = 0 : i64, scratch_operands = 0 : i64, tpu.core_type = #tpu.core_type<tc>, window_params = [{transform_indices = @transform_0, window_bounds = array<i64: 8, 8>}, {pipeline_mode = #tpu.pipeline_mode<synchronous>, transform_indices = @transform_1, window_bounds = array<i64: 8, 128>}, {pipeline_mode = #tpu.pipeline_mode<synchronous>, transform_indices = @transform_2, window_bounds = array<i64: 1, 128>}, {pipeline_mode = #tpu.pipeline_mode<synchronous>, transform_indices = @transform_3, window_bounds = array<i64: 128, 128>}, {pipeline_mode = #tpu.pipeline_mode<synchronous>, transform_indices = @transform_4, window_bounds = array<i64: 1, 128>}, {pipeline_mode = #tpu.pipeline_mode<synchronous>, transform_indices = @transform_5, window_bounds = array<i64: 128, 128>}, {pipeline_mode = #tpu.pipeline_mode<synchronous>, transform_indices = @transform_6, window_bounds = array<i64: 1, 128>}, {transform_indices = @transform_7, window_bounds = array<i64: 8, 128>}]} {
    %c0 = arith.constant 0 : index
    %c0_0 = arith.constant 0 : index
    %0 = vector.load %arg1[%c0, %c0_0] : memref<8x8xbf16, #tpu.memory_space<vmem>>, vector<8x8xbf16>
    %c0_1 = arith.constant 0 : index
    %c0_2 = arith.constant 0 : index
    %1 = vector.load %arg2[%c0_1, %c0_2] : memref<8x128xbf16, #tpu.memory_space<vmem>>, vector<8x128xbf16>
    %cst = arith.constant dense<0.000000e+00> : vector<8x128xf32>
    %2 = tpu.matmul %0, %1, %cst {dimension_numbers = #tpu.dot_dimension_numbers<[1], [0], [0], [1], [0, 0, 1, 1], [], []>} : vector<8x8xbf16>, vector<8x128xbf16>, vector<8x128xf32> -> vector<8x128xf32>
    %c0_3 = arith.constant 0 : index
    %c0_4 = arith.constant 0 : index
    %3 = vector.load %arg3[%c0_3, %c0_4] : memref<1x128xf32, #tpu.memory_space<vmem>>, vector<1x128xf32>
    %4 = vector.broadcast %3 : vector<1x128xf32> to vector<8x128xf32>
    %5 = arith.addf %2, %4 : vector<8x128xf32>
    %cst_5 = arith.constant 0.000000e+00 : f32
    %6 = vector.broadcast %cst_5 : f32 to vector<8x128xf32>
    %7 = arith.maximumf %5, %6 : vector<8x128xf32>
    %8 = arith.truncf %7 : vector<8x128xf32> to vector<8x128xbf16>
    %c0_6 = arith.constant 0 : index
    %c0_7 = arith.constant 0 : index
    %9 = vector.load %arg4[%c0_6, %c0_7] : memref<128x128xbf16, #tpu.memory_space<vmem>>, vector<128x128xbf16>
    %cst_8 = arith.constant dense<0.000000e+00> : vector<8x128xf32>
    %10 = tpu.matmul %8, %9, %cst_8 {dimension_numbers = #tpu.dot_dimension_numbers<[1], [0], [0], [1], [0, 0, 1, 1], [], []>} : vector<8x128xbf16>, vector<128x128xbf16>, vector<8x128xf32> -> vector<8x128xf32>
    %c0_9 = arith.constant 0 : index
    %c0_10 = arith.constant 0 : index
    %11 = vector.load %arg5[%c0_9, %c0_10] : memref<1x128xf32, #tpu.memory_space<vmem>>, vector<1x128xf32>
    %12 = vector.broadcast %11 : vector<1x128xf32> to vector<8x128xf32>
    %13 = arith.addf %10, %12 : vector<8x128xf32>
    %cst_11 = arith.constant 0.000000e+00 : f32
    %14 = vector.broadcast %cst_11 : f32 to vector<8x128xf32>
    %15 = arith.maximumf %13, %14 : vector<8x128xf32>
    %16 = arith.truncf %15 : vector<8x128xf32> to vector<8x128xbf16>
    %c0_12 = arith.constant 0 : index
    %c0_13 = arith.constant 0 : index
    %17 = vector.load %arg6[%c0_12, %c0_13] : memref<128x128xbf16, #tpu.memory_space<vmem>>, vector<128x128xbf16>
    %cst_14 = arith.constant dense<0.000000e+00> : vector<8x128xf32>
    %18 = tpu.matmul %16, %17, %cst_14 {dimension_numbers = #tpu.dot_dimension_numbers<[1], [0], [0], [1], [0, 0, 1, 1], [], []>} : vector<8x128xbf16>, vector<128x128xbf16>, vector<8x128xf32> -> vector<8x128xf32>
    %c0_15 = arith.constant 0 : index
    %c0_16 = arith.constant 0 : index
    %19 = vector.load %arg7[%c0_15, %c0_16] : memref<1x128xf32, #tpu.memory_space<vmem>>, vector<1x128xf32>
    %20 = vector.broadcast %19 : vector<1x128xf32> to vector<8x128xf32>
    %21 = arith.addf %18, %20 : vector<8x128xf32>
    %c0_17 = arith.constant 0 : index
    %c0_18 = arith.constant 0 : index
    %22 = vector.load %arg8[%c0_17, %c0_18] : memref<8x128xf32, #tpu.memory_space<vmem>>, vector<8x128xf32>
    tpu.vector_store %arg8[%c0_17, %c0_18], %21 {strides = array<i32>} : memref<8x128xf32, #tpu.memory_space<vmem>>, vector<8x128xf32>,
    return
  }
  func.func @transform_0(%arg0: i32) -> (i32, i32) {
    %c0_i32 = arith.constant 0 : i32
    %c0_i32_0 = arith.constant 0 : i32
    return %arg0, %c0_i32 : i32, i32
  }
  func.func @transform_1(%arg0: i32) -> (i32, i32) {
    %c0_i32 = arith.constant 0 : i32
    %c0_i32_0 = arith.constant 0 : i32
    %c0_i32_1 = arith.constant 0 : i32
    return %c0_i32, %c0_i32_0 : i32, i32
  }
  func.func @transform_2(%arg0: i32) -> (i32, i32) {
    %c0_i32 = arith.constant 0 : i32
    %c0_i32_0 = arith.constant 0 : i32
    %c0_i32_1 = arith.constant 0 : i32
    return %c0_i32, %c0_i32_0 : i32, i32
  }
  func.func @transform_3(%arg0: i32) -> (i32, i32) {
    %c0_i32 = arith.constant 0 : i32
    %c0_i32_0 = arith.constant 0 : i32
    %c0_i32_1 = arith.constant 0 : i32
    return %c0_i32, %c0_i32_0 : i32, i32
  }
  func.func @transform_4(%arg0: i32) -> (i32, i32) {
    %c0_i32 = arith.constant 0 : i32
    %c0_i32_0 = arith.constant 0 : i32
    %c0_i32_1 = arith.constant 0 : i32
    return %c0_i32, %c0_i32_0 : i32, i32
  }
  func.func @transform_5(%arg0: i32) -> (i32, i32) {
    %c0_i32 = arith.constant 0 : i32
    %c0_i32_0 = arith.constant 0 : i32
    %c0_i32_1 = arith.constant 0 : i32
    return %c0_i32, %c0_i32_0 : i32, i32
  }
  func.func @transform_6(%arg0: i32) -> (i32, i32) {
    %c0_i32 = arith.constant 0 : i32
    %c0_i32_0 = arith.constant 0 : i32
    %c0_i32_1 = arith.constant 0 : i32
    return %c0_i32, %c0_i32_0 : i32, i32
  }
  func.func @transform_7(%arg0: i32) -> (i32, i32) {
    %c0_i32 = arith.constant 0 : i32
    %c0_i32_0 = arith.constant 0 : i32
    return %arg0, %c0_i32 : i32, i32
  }
}

</mosaic_0001>

<bundles_post_ra>
// kernel: mlp_forward.1
= control target key start
LH: loop header
LB: loop body
LE: loop exit
PB: predicated region body
PF: predicated region fallthrough
CT: control target
= control target key end

     0   :  { %12 = vsyncpa [#allocation3], 0  ;;  %s612_s0 = inlined_call_operand.vmem [shape: bf16[8,8], index: 0, kind: input, shape index: {}]   ;;  %s613_s1 = inlined_call_operand.vmem [shape: bf16[8,128], index: 1, kind: input, shape index: {}]   ;;  %s614_s2 = inlined_call_operand.vmem [shape: f32[1,128], index: 2, kind: input, shape index: {}]   ;;  %s615_s3 = inlined_call_operand.hbm [shape: bf16[128,128], index: 3, kind: input, shape index: {}]   ;;  %s616_s4 = inlined_call_operand.vmem [shape: f32[1,128], index: 4, kind: input, shape index: {}]   ;;  %s617_s5 = inlined_call_operand.hbm [shape: bf16[128,128], index: 5, kind: input, shape index: {}]   ;;  %s618_s6 = inlined_call_operand.vmem [shape: f32[1,128], index: 6, kind: input, shape index: {}]   ;;  %s619_s7 = inlined_call_operand.vmem [shape: f32[8,128], index: 7, kind: output, shape index: {}]  }
   0x1   :  { %13 = vsyncpa [#allocation5], 0  ;;  %s501_s24 = smov [#allocation2]   ;;  %s453_s28 = scalar_lea.hbm %s615_s3, 1024 }
   0x2   :  { %s25_s25 = sshll.u32 %s501_s24, 4  ;;  %p454_p0 = scmp.ne.s32.totalorder %s615_s3, %s453_s28  ;;  %s26_s25 = int_to_ptr.vmem [resolvable:$true] %s25_s25 }
   0x3   :  { %p457_p1 = scmp.lt.u32.totalorder %s453_s28, %s615_s3 }
   0x5   :  { %p459_p2 = pnand %p457_p1, %p454_p0 }
   0x7   :  { %462 = shalt.err (!%p459_p2)
}
   0x8   :  { %s463_s10 = scalar_lea.vmem %s26_s25, 1024  ;;  %p468_p4 = scmp.lt.s32.totalorder %s26_s25, %s26_s25 }
   0x9   :  { %p464_p3 = scmp.ne.s32.totalorder %s26_s25, %s463_s10  ;;  %p469_p5 = scmp.lt.s32.totalorder %s463_s10, %s463_s10 }
   0xb   :  { %p470_p6 = por %p469_p5, %p468_p4 }
   0xd   :  { %p471_p7 = pnand %p470_p6, %p464_p3 }
   0xf   :  { %474 = shalt.err (!%p471_p7)
}
  0x10   :  { %s502_s11 = smov 64   ;;  %s503_s12 = smov 4  }
  0x11   :  { %31 = dma.hbm_to_vmem [thread:$0]  %s615_s3, 1024, %s26_s25, [#allocation3], %s502_s11, %s502_s11, %s503_s12  }
  0x12   :  { %s504_s15 = smov [#allocation4]   ;;  %s475_s19 = scalar_lea.hbm %s617_s5, 1024 }
  0x13   :  { %s39_s16 = sshll.u32 %s504_s15, 4  ;;  %p476_p8 = scmp.ne.s32.totalorder %s617_s5, %s475_s19  ;;  %s40_s16 = int_to_ptr.vmem [resolvable:$true] %s39_s16 }
  0x14   :  { %p479_p9 = scmp.lt.u32.totalorder %s475_s19, %s617_s5 }
  0x16   :  { %p481_p10 = pnand %p479_p9, %p476_p8 }
  0x18   :  { %484 = shalt.err (!%p481_p10)
}
  0x19   :  { %s485_s24 = scalar_lea.vmem %s40_s16, 1024  ;;  %p490_p12 = scmp.lt.s32.totalorder %s40_s16, %s40_s16 }
  0x1a   :  { %p486_p11 = scmp.ne.s32.totalorder %s40_s16, %s485_s24  ;;  %p491_p13 = scmp.lt.s32.totalorder %s485_s24, %s485_s24 }
  0x1c   :  { %p492_p0 = por %p491_p13, %p490_p12 }
  0x1e   :  { %p493_p1 = pnand %p492_p0, %p486_p11 }
  0x20   :  { %496 = shalt.err (!%p493_p1)
}
  0x21   :  { %45 = dma.hbm_to_vmem [thread:$0]  %s617_s5, 1024, %s40_s16, [#allocation5], %s502_s11, %s502_s11, %s503_s12  }
  0x22   :  { %497 = dma.done.wait [#allocation3], 1024  }
  0x23   :  { %498 = vsyncadd [#allocation3], 4294966272 }
  0x24   :  { %499 = dma.done.wait [#allocation5], 1024  }
  0x25   :  { %500 = vsyncadd [#allocation5], 4294966272  ;;  %v505_v0 = vmov 0.0   ;;  %vm506_vm0 = vmmov 0   ;;  %vm68_vm1 = vcmask 1043456   ;;  %vm64_vm2 = vcmask 64512  }
  0x26   :  { %385 = vmatprep.subr.bf16.mxu0 %v505_v0  ;;  %387 = vmatprep.mubr.msk.bf16.mxu0 %vm506_vm0, %v505_v0  ;;  %v56_v1 = vld [vmem:[%s613_s1] sm:$0xf]  ;;  %v438_v5 = vld [vmem:[#allocation2 + $0x8] sm:$0xff]   ;;  %v439_v6 = vld [vmem:[#allocation2 + $0x10] sm:$0xff]  }
  0x27   :  { %391 = vmatprep.subr.bf16.mxu1 %v505_v0  ;;  %407 = vmatprep.mubr.msk.bf16.mxu1 %vm506_vm0, %v505_v0  ;;  %v70_v2 = vsel %vm68_vm1, %v56_v1, 0  ;;  %v437_v3 = vld [vmem:[#allocation2] sm:$0xff]   ;;  %v440_v7 = vld [vmem:[#allocation2 + $0x18] sm:$0xff]   ;;  %v442_v9 = vld [vmem:[#allocation2 + $0x28] sm:$0xff]  }
  0x28   :  { %386 = vmatpush3.bf16.msra.mxu0 %v70_v2  ;;  %v55_v4 = vld [vmem:[%s612_s0] sm:$0xf]  ;;  %392 = vmatpush3.bf16.msra.mxu1 %v437_v3  ;;  %v443_v10 = vld [vmem:[#allocation2 + $0x30] sm:$0xff]   ;;  %v444_v11 = vld [vmem:[#allocation2 + $0x38] sm:$0xff]  }
  0x29   :  { %411 = vmatprep.subr.bf16.mxu0 %v505_v0  ;;  %393 = vmatprep.subr.bf16.mxu1 %v505_v0  ;;  %v441_v8 = vld [vmem:[#allocation2 + $0x20] sm:$0xff]   ;;  %v446_v13 = vld [vmem:[#allocation4 + $0x8] sm:$0xff]   ;;  %v447_v14 = vld [vmem:[#allocation4 + $0x10] sm:$0xff]  }
  0x2a   :  { %v445_v12 = vld [vmem:[#allocation4] sm:$0xff]   ;;  %v448_v15 = vld [vmem:[#allocation4 + $0x18] sm:$0xff]   ;;  %v450_v17 = vld [vmem:[#allocation4 + $0x28] sm:$0xff]  }
  0x2b   :  { %388 = vmatmul.mubr.msk.bf16.vlgmr.msra.gmra.mrb[0].mxu0 %vm64_vm2, %v55_v4  ;;  %v449_v16 = vld [vmem:[#allocation4 + $0x20] sm:$0xff]   ;;  %v451_v26 = vld [vmem:[#allocation4 + $0x30] sm:$0xff]   ;;  %v452_v27 = vld [vmem:[#allocation4 + $0x38] sm:$0xff]  }
  0x2c   :  { %427 = vmatprep.mubr.msk.bf16.mxu0 %vm506_vm0, %v505_v0  ;;  %394 = vmatpush3.bf16.msra.mxu1 %v438_v5  ;;  %v345_v18 = vld [vmem:[%s614_s2] ss:$0 sm:$0xff] }
  0x2d   :  { %395 = vmatprep.subr.bf16.mxu1 %v505_v0  ;;  %412 = vmatpush3.bf16.msra.mxu0 %v445_v12  ;;  %v347_v28 = vld [vmem:[%s616_s4] ss:$0 sm:$0xff] }
  0x2e   :  { %413 = vmatprep.subr.bf16.mxu0 %v505_v0  ;;  %v356_v36 = vld [vmem:[%s618_s6] ss:$0 sm:$0xff] }
  0x30   :  { %396 = vmatpush3.bf16.msra.mxu1 %v439_v6 }
  0x31   :  { %397 = vmatprep.subr.bf16.mxu1 %v505_v0  ;;  %414 = vmatpush3.bf16.msra.mxu0 %v446_v13 }
  0x32   :  { %415 = vmatprep.subr.bf16.mxu0 %v505_v0 }
  0x34   :  { %398 = vmatpush3.bf16.msra.mxu1 %v440_v7 }
  0x35   :  { %399 = vmatprep.subr.bf16.mxu1 %v505_v0  ;;  %416 = vmatpush3.bf16.msra.mxu0 %v447_v14 }
  0x36   :  { %417 = vmatprep.subr.bf16.mxu0 %v505_v0 }
  0x38   :  { %400 = vmatpush3.bf16.msra.mxu1 %v441_v8 }
  0x39   :  { %401 = vmatprep.subr.bf16.mxu1 %v505_v0  ;;  %418 = vmatpush3.bf16.msra.mxu0 %v448_v15 }
  0x3a   :  { %419 = vmatprep.subr.bf16.mxu0 %v505_v0 }
  0x3c   :  { %402 = vmatpush3.bf16.msra.mxu1 %v442_v9 }
  0x3d   :  { %403 = vmatprep.subr.bf16.mxu1 %v505_v0  ;;  %420 = vmatpush3.bf16.msra.mxu0 %v449_v16 }
  0x3e   :  { %421 = vmatprep.subr.bf16.mxu0 %v505_v0 }
  0x40   :  { %404 = vmatpush3.bf16.msra.mxu1 %v443_v10 }
  0x41   :  { %405 = vmatprep.subr.bf16.mxu1 %v505_v0  ;;  %422 = vmatpush3.bf16.msra.mxu0 %v450_v17 }
  0x42   :  { %423 = vmatprep.subr.bf16.mxu0 %v505_v0 }
  0x44   :  { %406 = vmatpush3.bf16.msra.mxu1 %v444_v11 }
  0x45   :  { %424 = vmatpush3.bf16.msra.mxu0 %v451_v26 }
  0x46   :  { %425 = vmatprep.subr.bf16.mxu0 %v505_v0 }
  0x49   :  { %426 = vmatpush3.bf16.msra.mxu0 %v452_v27 }
  0xfe   :  { %v106_v19 = vpop.f32.mrb[0].mxu0 }
  0xff   :  { %v107_v20 = vadd.f32 %v345_v18, %v106_v19  ;;  %v389_v21 = vpop.f32.mrb[1].mxu0 }
 0x100   :  { %v109_v22 = vpop.f32.mrb[2].mxu0 }
 0x101   :  { %v112_v23 = vmax.f32 %v107_v20, 0.0  ;;  %v390_v24 = vpop.f32.mrb[3].mxu0 }
 0x103   :  { %v113_v25 = vpack.c.bf16 %v112_v23, %v112_v23 }
 0x105   :  { %408 = vmatmul.mubr.bf16.vlgmr.msra.gmra.mrb[0].mxu1 %v113_v25 }
 0x1d8   :  { %v219_v29 = vpop.f32.mrb[0].mxu1 }
 0x1d9   :  { %v220_v30 = vadd.f32 %v347_v28, %v219_v29  ;;  %v409_v31 = vpop.f32.mrb[1].mxu1 }
 0x1da   :  { %v222_v32 = vpop.f32.mrb[2].mxu1 }
 0x1db   :  { %v225_v33 = vmax.f32 %v220_v30, 0.0  ;;  %v410_v34 = vpop.f32.mrb[3].mxu1 }
 0x1dd   :  { %v226_v35 = vpack.c.bf16 %v225_v33, %v225_v33 }
 0x1df   :  { %428 = vmatmul.mubr.bf16.vlgmr.msra.gmra.mrb[4].mxu0 %v226_v35 }
 0x2b2   :  { %v332_v37 = vpop.f32.mrb[4].mxu0 }
 0x2b3   :  { %v333_v38 = vadd.f32 %v356_v36, %v332_v37  ;;  %v429_v39 = vpop.f32.mrb[5].mxu0 }
 0x2b4   :  { %v335_v40 = vpop.f32.mrb[6].mxu0 }
 0x2b5   :  { %338 = vst [vmem:[%s619_s7] sm:$0xff] %v333_v38  ;;  %v430_v41 = vpop.f32.mrb[7].mxu0 }
 0x2b6   :  { %343 = vsyncpa [#allocation3], 1 }
 0x2b7   :  { %344 = vsyncpa [#allocation5], 1 }

</bundles_post_ra>
